<compile_context>
chip_gen: v7x
topology: tpu7x:2x2x1
jax: 0.10.0
libtpu: 0.0.40
codegen_flags: <defaults>
</compile_context>

<pallas_src>
import functools

import numpy as np
import jax
import jax.numpy as jnp
from jax.experimental import pallas as pl
from jax.experimental.pallas import tpu as pltpu


# ---------------------------------------------------------------------------
# Kernel
# ---------------------------------------------------------------------------
def _spatial_dropout_kernel(center_ref, coords_ref, wts_ref, o_ref, *, d2):
    """center_ref: SMEM (2,) f32 = (x_center, y_center)
       coords_ref: VMEM (2, C) f32, row 0 = x coords, row 1 = y coords (resident)
       wts_ref / o_ref: VMEM (TM, C) blocks of SA_wts in its native dtype."""
    # Per-channel keep mask: one vreg worth of VPU work, negligible vs the DMA.
    dx = coords_ref[0:1, :] - center_ref[0]              # (1, C) f32
    dy = coords_ref[1:2, :] - center_ref[1]              # (1, C) f32
    dist_sq = dx * dx + dy * dy                          # (1, C) f32, no sqrt needed
    keep = jnp.where(dist_sq < d2, 0.0, 1.0).astype(o_ref.dtype)  # (1, C)
    # Sublane-broadcast multiply over the block, single wide store.
    o_ref[...] = wts_ref[...] * keep


# ---------------------------------------------------------------------------
# Wrapper
# ---------------------------------------------------------------------------
def spatial_dropout_pallas(sa_wts, x, y, d_drop, drop_center_id, *, row_tile=None):
    """SA_wts: (..., C);  x, y: (C,) channel coordinates;  d_drop: float;
    drop_center_id: python int (host-side random choice, as in the module)."""
    C = sa_wts.shape[-1]
    assert x.shape == (C,) and y.shape == (C,), "shape[-1] must equal num_channels"

    lead_shape = sa_wts.shape[:-1]
    N = int(np.prod(lead_shape)) if lead_shape else 1
    wts2d = sa_wts.reshape(N, C)                         # native dtype, no upcast
    dtype = wts2d.dtype
    itemsize = jnp.dtype(dtype).itemsize

    coords = jnp.stack([x.astype(jnp.float32), y.astype(jnp.float32)], axis=0)      # (2, C)
    center = jnp.stack([x[drop_center_id], y[drop_center_id]]).astype(jnp.float32)  # (2,)

    # Squared-radius compile-time constant (d_drop <= 0 -> nothing dropped,
    # matching the strict `dist < d_drop` of the original module).
    d2 = float(max(float(d_drop), 0.0)) ** 2

    # Row tile: ~0.5 MiB per buffer, multiple of 8 sublanes; small-input fast
    # path keeps a single block when the whole slab fits in one tile.
    if row_tile is None:
        target_bytes = 512 * 1024
        row_tile = max(8, (target_bytes // max(C * itemsize, 1)) // 8 * 8)
    tm = N if N <= row_tile else int(row_tile)
    num_tiles = pl.cdiv(N, tm)

    kernel = functools.partial(_spatial_dropout_kernel, d2=d2)

    grid_spec = pltpu.PrefetchScalarGridSpec(
        num_scalar_prefetch=0,
        grid=(num_tiles,),
        in_specs=[
            pl.BlockSpec(memory_space=pltpu.MemorySpace.SMEM),   # center (2,)
            pl.BlockSpec((2, C), lambda i: (0, 0)),              # coords, resident
            pl.BlockSpec((tm, C), lambda i: (i, 0)),             # SA_wts row tiles
        ],
        out_specs=pl.BlockSpec((tm, C), lambda i: (i, 0)),
    )

    out = pl.pallas_call(
        kernel,
        out_shape=jax.ShapeDtypeStruct((N, C), dtype),
        grid_spec=grid_spec,
        compiler_params=pltpu.CompilerParams(
            dimension_semantics=("parallel",),
        ),
        cost_estimate=pl.CostEstimate(
            flops=N * C,
            transcendentals=0,
            bytes_accessed=2 * N * C * itemsize + 2 * C * 4,
        ),
    )(center, coords, wts2d)
    return out.reshape(sa_wts.shape)


# ---------------------------------------------------------------------------
# Pure-JAX reference (mirrors the PyTorch forward, keeps native dtype)
# ---------------------------------------------------------------------------
def spatial_dropout_reference(sa_wts, x, y, d_drop, drop_center_id):
    dist = jnp.sqrt((x - x[drop_center_id]) ** 2 + (y - y[drop_center_id]) ** 2)
    keep = jnp.where(dist < d_drop, 0.0, 1.0).astype(sa_wts.dtype)
    return sa_wts * keep  # broadcast over last dim


# ---------------------------------------------------------------------------
# Main
# ---------------------------------------------------------------------------
if __name__ == "__main__":
    C = 128
    d_drop = 0.3

    key = jax.random.PRNGKey(0)
    kx, ky, kw1, kw2, kw3 = jax.random.split(key, 5)
    x = jax.random.uniform(kx, (C,), jnp.float32)          # channel x coordinates
    y = jax.random.uniform(ky, (C,), jnp.float32)          # channel y coordinates

    # Host-side drop-center selection, as in the PyTorch module (seeded).
    np.random.seed(0)
    drop_center_id = int(np.random.randint(C))

    def check(sa_wts, **kw):
        out = jax.block_until_ready(
            spatial_dropout_pallas(sa_wts, x, y, d_drop, drop_center_id, **kw))
        ref = jax.block_until_ready(
            spatial_dropout_reference(sa_wts, x, y, d_drop, drop_center_id))
        assert out.shape == sa_wts.shape and out.dtype == sa_wts.dtype
        np.testing.assert_allclose(
            np.asarray(out, dtype=np.float32), np.asarray(ref, dtype=np.float32),
            rtol=1e-6, atol=1e-6)

    # 1) Small f32 case (single-block fast path): B=2, S=16, C=128.
    check(jax.random.normal(kw1, (2, 16, C), jnp.float32))

    # 2) Native-bf16 case (no upcast in the wrapper): B=2, S=32, C=128.
    check(jax.random.normal(kw2, (2, 32, C), jnp.bfloat16))

    # 3) Multi-tile grid path: N=512 rows with a forced 128-row tile -> 4 steps.
    check(jax.random.normal(kw3, (2, 256, C), jnp.float32), row_tile=128)

    print("KERNEL_OK")
</pallas_src>

<mosaic_0001>
module attributes {stable_mosaic.version = 11 : i64} {
  func.func @_spatial_dropout_kernel(%arg0: i32, %arg1: memref<2xf32, #tpu.memory_space<smem>>, %arg2: memref<2x128xf32, #tpu.memory_space<vmem>>, %arg3: memref<32x128xf32, #tpu.memory_space<vmem>>, %arg4: memref<32x128xf32, #tpu.memory_space<vmem>>) attributes {dimension_semantics = [#tpu.dimension_semantics<parallel>], iteration_bounds = array<i64: 1>, scalar_prefetch = 0 : i64, scratch_operands = 0 : i64, tpu.core_type = #tpu.core_type<tc>, window_params = [{transform_indices = @transform_0, window_bounds = array<i64: 2>}, {pipeline_mode = #tpu.pipeline_mode<synchronous>, transform_indices = @transform_1, window_bounds = array<i64: 2, 128>}, {transform_indices = @transform_2, window_bounds = array<i64: 32, 128>}, {transform_indices = @transform_3, window_bounds = array<i64: 32, 128>}]} {
    %c0 = arith.constant 0 : index
    %c0_0 = arith.constant 0 : index
    %0 = vector.load %arg2[%c0, %c0_0] : memref<2x128xf32, #tpu.memory_space<vmem>>, vector<1x128xf32>
    %c0_1 = arith.constant 0 : index
    %1 = memref.load %arg1[%c0_1] : memref<2xf32, #tpu.memory_space<smem>>
    %2 = vector.broadcast %1 : f32 to vector<1x128xf32>
    %3 = arith.subf %0, %2 : vector<1x128xf32>
    %c1 = arith.constant 1 : index
    %c0_2 = arith.constant 0 : index
    %4 = vector.load %arg2[%c1, %c0_2] : memref<2x128xf32, #tpu.memory_space<vmem>>, vector<1x128xf32>
    %c1_3 = arith.constant 1 : index
    %5 = memref.load %arg1[%c1_3] : memref<2xf32, #tpu.memory_space<smem>>
    %6 = vector.broadcast %5 : f32 to vector<1x128xf32>
    %7 = arith.subf %4, %6 : vector<1x128xf32>
    %8 = arith.mulf %3, %3 : vector<1x128xf32>
    %9 = arith.mulf %7, %7 : vector<1x128xf32>
    %10 = arith.addf %8, %9 : vector<1x128xf32>
    %cst = arith.constant 9.000000e-02 : f32
    %11 = vector.broadcast %cst : f32 to vector<1x128xf32>
    %12 = arith.cmpf olt, %10, %11 : vector<1x128xf32>
    %cst_4 = arith.constant 0.000000e+00 : f32
    %cst_5 = arith.constant 1.000000e+00 : f32
    %13 = vector.broadcast %cst_4 : f32 to vector<1x128xf32>
    %14 = vector.broadcast %cst_5 : f32 to vector<1x128xf32>
    %15 = arith.select %12, %13, %14 : vector<1x128xi1>, vector<1x128xf32>
    %c0_6 = arith.constant 0 : index
    %c0_7 = arith.constant 0 : index
    %16 = vector.load %arg3[%c0_6, %c0_7] : memref<32x128xf32, #tpu.memory_space<vmem>>, vector<32x128xf32>
    %17 = vector.broadcast %15 : vector<1x128xf32> to vector<32x128xf32>
    %18 = arith.mulf %16, %17 : vector<32x128xf32>
    %c0_8 = arith.constant 0 : index
    %c0_9 = arith.constant 0 : index
    %19 = vector.load %arg4[%c0_8, %c0_9] : memref<32x128xf32, #tpu.memory_space<vmem>>, vector<32x128xf32>
    tpu.vector_store %arg4[%c0_8, %c0_9], %18 {strides = array<i32>} : memref<32x128xf32, #tpu.memory_space<vmem>>, vector<32x128xf32>,
    return
  }
  func.func @transform_0(%arg0: i32) -> i32 {
    %c0_i32 = arith.constant 0 : i32
    %c0_i32_0 = arith.constant 0 : i32
    return %c0_i32 : i32
  }
  func.func @transform_1(%arg0: i32) -> (i32, i32) {
    %c0_i32 = arith.constant 0 : i32
    %c0_i32_0 = arith.constant 0 : i32
    %c0_i32_1 = arith.constant 0 : i32
    return %c0_i32, %c0_i32_0 : i32, i32
  }
  func.func @transform_2(%arg0: i32) -> (i32, i32) {
    %c0_i32 = arith.constant 0 : i32
    %c0_i32_0 = arith.constant 0 : i32
    return %arg0, %c0_i32 : i32, i32
  }
  func.func @transform_3(%arg0: i32) -> (i32, i32) {
    %c0_i32 = arith.constant 0 : i32
    %c0_i32_0 = arith.constant 0 : i32
    return %arg0, %c0_i32 : i32, i32
  }
}

</mosaic_0001>

<bundles_post_ra>
// kernel: tpu_custom_call.1
= control target key start
LH: loop header
LB: loop body
LE: loop exit
PB: predicated region body
PF: predicated region fallthrough
CT: control target
= control target key end

     0   :  { %8 = vsyncpa [#allocation5], 0  ;;  %s228_s0 = inlined_call_operand.hbm [shape: f32[2], index: 0, kind: input, shape index: {}]   ;;  %s229_s1 = inlined_call_operand.vmem [shape: f32[2,128], index: 1, kind: input, shape index: {}]   ;;  %s230_s2 = inlined_call_operand.hbm [shape: f32[32,128], index: 2, kind: input, shape index: {}]   ;;  %s231_s3 = inlined_call_operand.hbm [shape: f32[32,128], index: 3, kind: output, shape index: {}]  }
   0x1   :  { %9 = vsyncpa [#allocation3], 0 }
   0x2   :  { %10 = vsyncpa [#allocation4], 0  ;;  %s94_s14 = scalar_lea.hbm %s228_s0, 16 }
   0x3   :  { %p95_p0 = scmp.ne.s32.totalorder %s228_s0, %s94_s14  ;;  %p98_p1 = scmp.lt.u32.totalorder %s94_s14, %s228_s0 }
   0x5   :  { %p100_p2 = pnand %p98_p1, %p95_p0 }
   0x7   :  { %103 = shalt.err (!%p100_p2)
}
   0x8   :  { %s154_s19 = smov [#allocation2]   ;;  %s155_s22 = smov [#allocation6]  }
   0x9   :  { %18 = dma.hbm_to_smem %s228_s0, 16, %s154_s19, [#allocation5]  }
   0xa   :  { %s26_s23 = sshll.u32 %s155_s22, 4  ;;  %s104_s26 = scalar_lea.hbm %s230_s2, 512  ;;  %s27_s23 = int_to_ptr.vmem [resolvable:$true] %s26_s23 }
   0xb   :  { %p105_p3 = scmp.ne.s32.totalorder %s230_s2, %s104_s26  ;;  %p108_p4 = scmp.lt.u32.totalorder %s104_s26, %s230_s2 }
   0xd   :  { %p110_p5 = pnand %p108_p4, %p105_p3 }
   0xf   :  { %113 = shalt.err (!%p110_p5)
}
  0x10   :  { %s114_s4 = scalar_lea.vmem %s27_s23, 512  ;;  %p119_p7 = scmp.lt.s32.totalorder %s27_s23, %s27_s23 }
  0x11   :  { %p115_p6 = scmp.ne.s32.totalorder %s27_s23, %s114_s4  ;;  %p120_p8 = scmp.lt.s32.totalorder %s114_s4, %s114_s4 }
  0x13   :  { %p121_p9 = por %p120_p8, %p119_p7 }
  0x15   :  { %p122_p10 = pnand %p121_p9, %p115_p6 }
  0x17   :  { %125 = shalt.err (!%p122_p10)
}
  0x18   :  { %s156_s0 = smov 128   ;;  %s157_s5 = smov 8  }
  0x19   :  { %32 = dma.hbm_to_vmem [thread:$0]  %s230_s2, 512, %s27_s23, [#allocation3], %s156_s0, %s156_s0, %s157_s5  }
  0x1a   :  { %148 = dma.done.wait [#allocation5], 16  }
  0x1b   :  { %149 = vsyncadd [#allocation5], 4294967280 }
  0x1c   :  { %150 = dma.done.wait [#allocation3], 512  }
  0x1d   :  { %151 = vsyncadd [#allocation3], 4294966784 }
  0x1e   :  { %39 = sfence }
  0x1f   :  { %s41_s8 = sld [smem:[#allocation2]]  ;;  %s87_s9 = sld [smem:[#allocation2 + $0x1]]  ;;  %v40_v0 = vld [vmem:[%s229_s1] sm:$0x1]  ;;  %v57_v1 = vlaneseq  ;;  %v44_v2 = vld [vmem:[%s229_s1 + $0x1] sm:$0x1] }
  0x20   :  { %v53_v12 = vld [vmem:[#allocation6] sm:$0xff]  ;;  %v158_v13 = vmov 1.0   ;;  %v54_v15 = vld [vmem:[#allocation6 + $0x8] sm:$0xff]  ;;  %v55_v16 = vld [vmem:[#allocation6 + $0x10] sm:$0xff]  ;;  %s159_s2 = smov [#allocation7]  }
  0x21   :  { %v58_v7 = vshrl.u32 %v57_v1, 7  ;;  %v56_v17 = vld [vmem:[#allocation6 + $0x18] sm:$0xff]  ;;  %s74_s14 = sshll.u32 %s159_s2, 4  ;;  %s75_s14 = int_to_ptr.vmem [resolvable:$true] %s74_s14 }
  0x22   :  { %s126_s1 = scalar_lea.vmem %s75_s14, 512  ;;  %p131_p12 = scmp.lt.s32.totalorder %s75_s14, %s75_s14 }
  0x23   :  { %v59_v11 = vsub.s32 0, %v58_v7  ;;  %p127_p11 = scmp.ne.s32.totalorder %s75_s14, %s126_s1  ;;  %p132_p13 = scmp.lt.s32.totalorder %s126_s1, %s126_s1 }
  0x25   :  { %v42_v3 = vstv %s41_s8  ;;  %v46_v5 = vstv %s87_s9  ;;  %p133_p0 = por %p132_p13, %p131_p12 }
  0x26   :  { %v43_v4 = vsub.f32 %v40_v0, %v42_v3  ;;  %v47_v6 = vsub.f32 %v44_v2, %v46_v5 }
  0x27   :  { %p134_p1 = pnand %p133_p0, %p127_p11 }
  0x28   :  { %v48_v8 = vmul.f32 %v43_v4, %v43_v4  ;;  %v49_v9 = vmul.f32 %v47_v6, %v47_v6 }
  0x2a   :  { %v50_v10 = vadd.f32 %v49_v9, %v48_v8 }
  0x2c   :  { %vm51_vm0 = vcmp.lt.f32.partialorder %v50_v10, 0.09 }
  0x2d   :  { %v52_v14 = vsel %vm51_vm0, 0.0, %v158_v13 }
  0x2e   :  { %v60_v18 = vrot.slane %v52_v14, %v59_v11 }
  0x30   :  { %v61_v19 = vmul.f32 %v60_v18, %v53_v12  ;;  %v62_v20 = vmul.f32 %v60_v18, %v54_v15  ;;  %v63_v21 = vmul.f32 %v60_v18, %v55_v16  ;;  %v64_v22 = vmul.f32 %v60_v18, %v56_v17 }
  0x32   :  { %65 = vst [vmem:[#allocation7] sm:$0xff] %v61_v19  ;;  %66 = vst [vmem:[#allocation7 + $0x8] sm:$0xff] %v62_v20 }
  0x33   :  { %67 = vst [vmem:[#allocation7 + $0x10] sm:$0xff] %v63_v21  ;;  %68 = vst [vmem:[#allocation7 + $0x18] sm:$0xff] %v64_v22 }
  0x34   :  { %137 = shalt.err (!%p134_p1)
}
  0x35   :  { %s138_s17 = scalar_lea.hbm %s231_s3, 512 }
  0x36   :  { %p139_p2 = scmp.ne.s32.totalorder %s231_s3, %s138_s17  ;;  %p142_p3 = scmp.lt.u32.totalorder %s138_s17, %s231_s3 }
  0x38   :  { %p144_p4 = pnand %p142_p3, %p139_p2 }
  0x3a   :  { %147 = shalt.err (!%p144_p4)
}
  0x3b   :  { %80 = dma.vmem_to_hbm [thread:$0]  %s75_s14, 512, %s231_s3, [#allocation4], %s156_s0, %s156_s0, %s157_s5  }
  0x3c   :  { %152 = dma.done.wait [#allocation4], 512  }
  0x3d   :  { %153 = vsyncadd [#allocation4], 4294966784 }
  0x3e   :  { %84 = vsyncpa [#allocation3], 1 }
  0x3f   :  { %85 = vsyncpa [#allocation4], 1 }
  0x40   :  { %86 = vsyncpa [#allocation5], 1 }

</bundles_post_ra>
